<compile_context>
chip_gen: v7x
topology: tpu7x:2x2x1
jax: 0.10.0
libtpu: 0.0.40
codegen_flags: <defaults>
</compile_context>

<pallas_src>
import jax
import jax.numpy as jnp
from jax.experimental import pallas as pl
from jax.experimental.pallas import tpu as pltpu

Z_DIM = 128
_SUBLANE = 8  # f32 sublane count of one vreg tile


def _sampler2_kernel(x_ref, z_ref, o_ref):
    # x_ref: [Bp, 2*Z_DIM], z_ref: [Bp, Z_DIM], o_ref: [Bp, Z_DIM]
    mu = x_ref[:, :Z_DIM]          # lane-aligned view (cols 0..127)
    log_var = x_ref[:, Z_DIM:]     # lane-aligned view (cols 128..255)
    # z_c = mu + exp(log_var / 2) * z_signal   (exp -> EUP, mul/add -> VPU)
    o_ref[...] = mu + jnp.exp(log_var * 0.5) * z_ref[...]


def sampler2(x, z_signal):
    """x: [B, 2*Z_DIM] f32, z_signal: [B, Z_DIM] f32 -> [B, Z_DIM] f32."""
    b, two_z = x.shape
    assert two_z == 2 * Z_DIM
    assert z_signal.shape == (b, Z_DIM)

    # Pad batch to a full sublane multiple so loads/stores are unmasked full
    # vreg ops. Padded rows compute 0 + exp(0)*0 = 0 and are sliced off.
    bp = ((b + _SUBLANE - 1) // _SUBLANE) * _SUBLANE
    if bp != b:
        x_p = jnp.zeros((bp, two_z), x.dtype).at[:b].set(x)
        z_p = jnp.zeros((bp, Z_DIM), z_signal.dtype).at[:b].set(z_signal)
    else:
        x_p, z_p = x, z_signal

    out = pl.pallas_call(
        _sampler2_kernel,
        out_shape=jax.ShapeDtypeStruct((bp, Z_DIM), x.dtype),
        # Gridless: full arrays land in VMEM, no pipelining machinery.
        in_specs=[
            pl.BlockSpec(memory_space=pltpu.MemorySpace.VMEM),
            pl.BlockSpec(memory_space=pltpu.MemorySpace.VMEM),
        ],
        out_specs=pl.BlockSpec(memory_space=pltpu.MemorySpace.VMEM),
    )(x_p, z_p)
    return out[:b]


if __name__ == "__main__":
    key = jax.random.PRNGKey(0)
    kx, kz = jax.random.split(key)

    # Batch is 5, matching the PyTorch module's fixed torch.randn(5, z_dim).
    B = 5
    x = jax.random.normal(kx, (B, 2 * Z_DIM), dtype=jnp.float32)
    # Deterministic stand-in for torch.randn(5, z_dim).cuda()
    z_signal = jax.random.normal(kz, (B, Z_DIM), dtype=jnp.float32)

    out = sampler2(x, z_signal)
    out = jax.block_until_ready(out)

    # Reference check in plain JAX.
    ref = x[:, :Z_DIM] + jnp.exp(x[:, Z_DIM:] / 2.0) * z_signal
    assert out.shape == (B, Z_DIM)
    assert jnp.allclose(out, ref, atol=1e-5, rtol=1e-5)

    print("KERNEL_OK")
</pallas_src>

<mosaic_0001>
module attributes {stable_mosaic.version = 11 : i64} {
  func.func @_sampler2_kernel(%arg0: memref<8x256xf32, #tpu.memory_space<vmem>>, %arg1: memref<8x128xf32, #tpu.memory_space<vmem>>, %arg2: memref<8x128xf32, #tpu.memory_space<vmem>>) attributes {dimension_semantics = [], scalar_prefetch = 0 : i64, scratch_operands = 0 : i64, tpu.core_type = #tpu.core_type<tc>} {
    %c0 = arith.constant 0 : index
    %c0_0 = arith.constant 0 : index
    %0 = vector.load %arg0[%c0, %c0_0] : memref<8x256xf32, #tpu.memory_space<vmem>>, vector<8x128xf32>
    %c0_1 = arith.constant 0 : index
    %c128 = arith.constant 128 : index
    %1 = vector.load %arg0[%c0_1, %c128] : memref<8x256xf32, #tpu.memory_space<vmem>>, vector<8x128xf32>
    %cst = arith.constant 5.000000e-01 : f32
    %2 = vector.broadcast %cst : f32 to vector<8x128xf32>
    %3 = arith.mulf %1, %2 : vector<8x128xf32>
    %4 = math.exp %3 : vector<8x128xf32>
    %c0_2 = arith.constant 0 : index
    %c0_3 = arith.constant 0 : index
    %5 = vector.load %arg1[%c0_2, %c0_3] : memref<8x128xf32, #tpu.memory_space<vmem>>, vector<8x128xf32>
    %6 = arith.mulf %4, %5 : vector<8x128xf32>
    %7 = arith.addf %0, %6 : vector<8x128xf32>
    %c0_4 = arith.constant 0 : index
    %c0_5 = arith.constant 0 : index
    %8 = vector.load %arg2[%c0_4, %c0_5] : memref<8x128xf32, #tpu.memory_space<vmem>>, vector<8x128xf32>
    tpu.vector_store %arg2[%c0_4, %c0_5], %7 {strides = array<i32>} : memref<8x128xf32, #tpu.memory_space<vmem>>, vector<8x128xf32>,
    return
  }
}

</mosaic_0001>

<bundles_post_ra>
// kernel: tpu_custom_call.1
= control target key start
LH: loop header
LB: loop body
LE: loop exit
PB: predicated region body
PF: predicated region fallthrough
CT: control target
= control target key end

     0   :  { %7 = vsyncpa [#allocation3], 0  ;;  %s192_s0 = inlined_call_operand.hbm [shape: f32[8,256], index: 0, kind: input, shape index: {}]   ;;  %s193_s1 = inlined_call_operand.hbm [shape: f32[8,128], index: 1, kind: input, shape index: {}]   ;;  %s194_s2 = inlined_call_operand.hbm [shape: f32[8,128], index: 2, kind: output, shape index: {}]  }
   0x1   :  { %8 = vsyncpa [#allocation6], 0 }
   0x2   :  { %9 = vsyncpa [#allocation4], 0  ;;  %s138_s9 = smov [#allocation2]   ;;  %s139_s11 = smov [#allocation5]  }
   0x3   :  { %s16_s10 = sshll.u32 %s138_s9, 4  ;;  %s26_s12 = sshll.u32 %s139_s11, 4  ;;  %s17_s10 = int_to_ptr.vmem [resolvable:$true] %s16_s10  ;;  %s27_s12 = int_to_ptr.vmem [resolvable:$true] %s26_s12 }
   0x4   :  { %s66_s15 = scalar_lea.hbm %s192_s0, 256 }
   0x5   :  { %p67_p0 = scmp.ne.s32.totalorder %s192_s0, %s66_s15  ;;  %p70_p1 = scmp.lt.u32.totalorder %s66_s15, %s192_s0 }
   0x7   :  { %p72_p2 = pnand %p70_p1, %p67_p0 }
   0x9   :  { %75 = shalt.err (!%p72_p2)
}
   0xa   :  { %s76_s20 = scalar_lea.vmem %s17_s10, 256  ;;  %p81_p4 = scmp.lt.s32.totalorder %s17_s10, %s17_s10 }
   0xb   :  { %p77_p3 = scmp.ne.s32.totalorder %s17_s10, %s76_s20  ;;  %p82_p5 = scmp.lt.s32.totalorder %s76_s20, %s76_s20 }
   0xd   :  { %p83_p6 = por %p82_p5, %p81_p4 }
   0xf   :  { %p84_p7 = pnand %p83_p6, %p77_p3 }
  0x11   :  { %87 = shalt.err (!%p84_p7)
}
  0x12   :  { %19 = dma.hbm_to_vmem [thread:$0]  %s192_s0, 256, %s17_s10, [#allocation3]  }
  0x13   :  { %s88_s25 = scalar_lea.hbm %s193_s1, 128 }
  0x14   :  { %p89_p8 = scmp.ne.s32.totalorder %s193_s1, %s88_s25  ;;  %p92_p9 = scmp.lt.u32.totalorder %s88_s25, %s193_s1 }
  0x16   :  { %p94_p10 = pnand %p92_p9, %p89_p8 }
  0x18   :  { %97 = shalt.err (!%p94_p10)
}
  0x19   :  { %s98_s30 = scalar_lea.vmem %s27_s12, 128  ;;  %p103_p12 = scmp.lt.s32.totalorder %s27_s12, %s27_s12 }
  0x1a   :  { %p99_p11 = scmp.ne.s32.totalorder %s27_s12, %s98_s30  ;;  %p104_p13 = scmp.lt.s32.totalorder %s98_s30, %s98_s30 }
  0x1c   :  { %p105_p0 = por %p104_p13, %p103_p12 }
  0x1e   :  { %p106_p1 = pnand %p105_p0, %p99_p11 }
  0x20   :  { %109 = shalt.err (!%p106_p1)
}
  0x21   :  { %29 = dma.hbm_to_vmem [thread:$0]  %s193_s1, 128, %s27_s12, [#allocation6]  }
  0x22   :  { %132 = dma.done.wait [#allocation3], 256  }
  0x23   :  { %133 = vsyncadd [#allocation3], 4294967040 }
  0x24   :  { %134 = dma.done.wait [#allocation6], 128  }
  0x25   :  { %135 = vsyncadd [#allocation6], 4294967168  ;;  %v37_v0 = vld [vmem:[#allocation2 + $0x8] sm:$0xff]  ;;  %v41_v3 = vld [vmem:[#allocation5] sm:$0xff]  ;;  %s140_s4 = smov [#allocation7]  }
  0x26   :  { %v38_v1 = vmul.f32 0.5, %v37_v0  ;;  %v36_v5 = vld [vmem:[#allocation2] sm:$0xff]  ;;  %s51_s5 = sshll.u32 %s140_s4, 4  ;;  %s52_s5 = int_to_ptr.vmem [resolvable:$true] %s51_s5 }
  0x27   :  { %s110_s6 = scalar_lea.vmem %s52_s5, 128  ;;  %p115_p3 = scmp.lt.s32.totalorder %s52_s5, %s52_s5 }
  0x28   :  { %v39_v2 = vmul.f32 1.442695, %v38_v1  ;;  %p111_p2 = scmp.ne.s32.totalorder %s52_s5, %s110_s6  ;;  %p116_p4 = scmp.lt.s32.totalorder %s110_s6, %s110_s6 }
  0x2a   :  { %64 = vpow2.f32 %v39_v2  ;;  %p117_p5 = por %p116_p4, %p115_p3 }
  0x2c   :  { %p118_p6 = pnand %p117_p5, %p111_p2 }
  0x34   :  { %v65_v4 = vpop.eup %64 }
  0x35   :  { %v42_v6 = vmul.f32 %v65_v4, %v41_v3 }
  0x37   :  { %v43_v7 = vadd.f32 %v42_v6, %v36_v5 }
  0x39   :  { %44 = vst [vmem:[#allocation7] sm:$0xff] %v43_v7 }
  0x3a   :  { %121 = shalt.err (!%p118_p6)
}
  0x3b   :  { %s122_s8 = scalar_lea.hbm %s194_s2, 128 }
  0x3c   :  { %p123_p7 = scmp.ne.s32.totalorder %s194_s2, %s122_s8  ;;  %p126_p8 = scmp.lt.u32.totalorder %s122_s8, %s194_s2 }
  0x3e   :  { %p128_p9 = pnand %p126_p8, %p123_p7 }
  0x40   :  { %131 = shalt.err (!%p128_p9)
}
  0x41   :  { %54 = dma.vmem_to_hbm [thread:$0]  %s52_s5, 128, %s194_s2, [#allocation4]  }
  0x42   :  { %136 = dma.done.wait [#allocation4], 128  }
  0x43   :  { %137 = vsyncadd [#allocation4], 4294967168 }
  0x44   :  { %58 = vsyncpa [#allocation3], 1 }
  0x45   :  { %59 = vsyncpa [#allocation6], 1 }
  0x46   :  { %60 = vsyncpa [#allocation4], 1 }

</bundles_post_ra>
